<compile_context>
chip_gen: v7x
topology: tpu7x:2x2x1
jax: 0.10.0
libtpu: 0.0.40
codegen_flags: <defaults>
</compile_context>

<pallas_src>
import functools
import math

import jax
import jax.numpy as jnp
import numpy as np
from jax.experimental import pallas as pl
from jax.experimental.pallas import tpu as pltpu


# ---------------------------------------------------------------------------
# VMEM-aware tile sizing helpers
# ---------------------------------------------------------------------------
def _vmem_capacity_bytes():
    try:
        cap = int(getattr(pltpu.get_tpu_info(), "vmem_capacity_bytes"))
        if cap > 0:
            return cap
    except Exception:
        pass
    return 64 * 1024 * 1024  # conservative default (v7x per-TensorCore VMEM)


def _sublane_multiple(dtype):
    itemsize = np.dtype(dtype).itemsize
    if itemsize >= 4:
        return 8
    if itemsize == 2:
        return 16
    return 32


def _round_up(a, m):
    return ((a + m - 1) // m) * m


def _cdiv(a, b):
    return -(-a // b)


_MAX_TILE_ROWS = 8192  # raised from 1024: target multi-MiB input blocks


def _auto_tile_rows(rows, sub, bytes_per_row, budget, max_rows=_MAX_TILE_ROWS):
    """Largest sublane-aligned row tile whose pipelined buffers fit `budget` bytes."""
    if rows <= sub:
        return rows  # block == full array extent: always a legal shape
    t = budget // max(bytes_per_row, 1)
    t = min(int(t), max_rows, _round_up(rows, sub))
    return max((t // sub) * sub, sub)


def _cap_for_megacore(tile_rows, rows, sub):
    """Ensure the parallel row axis has >= 2 grid steps (keeps 2 TCs busy on v7x)."""
    if rows <= sub:
        return tile_rows
    return max(min(tile_rows, _round_up(_cdiv(rows, 2), sub)), sub)


def _mxu_dtype(w_dtype):
    # v5e/v6e/v7x MXUs are bf16-native; feed bf16 when weights are f32.
    return jnp.bfloat16 if np.dtype(w_dtype).itemsize >= 4 else w_dtype


# ---------------------------------------------------------------------------
# LayerNorm kernel (general PreNorm path: arbitrary fn applied afterwards)
# ---------------------------------------------------------------------------
def _layernorm_kernel(x_ref, g_ref, b_ref, o_ref, *, eps):
    # x_ref: (tile_rows, dim); g_ref/b_ref: (1, dim)
    x = x_ref[...].astype(jnp.float32)
    inv_dim = 1.0 / x.shape[-1]
    mean = jnp.sum(x, axis=-1, keepdims=True) * inv_dim
    c = x - mean
    var = jnp.sum(c * c, axis=-1, keepdims=True) * inv_dim  # biased, like torch LN
    y = c * jax.lax.rsqrt(var + eps)
    g = g_ref[...].astype(jnp.float32)
    b = b_ref[...].astype(jnp.float32)
    o_ref[...] = (y * g + b).astype(o_ref.dtype)


def layernorm_pallas(x, gamma, beta, *, eps=1e-5, tile_rows=None):
    """LayerNorm over the last axis as a Pallas TPU kernel. x: (..., dim)."""
    orig_shape = x.shape
    dim = orig_shape[-1]
    rows = math.prod(orig_shape[:-1]) if len(orig_shape) > 1 else 1
    x2 = x.reshape(rows, dim)
    g2 = gamma.reshape(1, dim)
    b2 = beta.reshape(1, dim)

    sub = _sublane_multiple(x.dtype)
    cap = _vmem_capacity_bytes()
    vmem_limit = int(cap * 3 // 4)
    if tile_rows is None:
        x_b = np.dtype(x.dtype).itemsize
        o_b = x_b
        # double-buffered in + out tiles plus in-kernel f32 temporaries
        bytes_per_row = dim * (2 * x_b + 2 * o_b + 12)
        budget = max(vmem_limit - (4 << 20), sub * bytes_per_row)
        tile_rows = _auto_tile_rows(rows, sub, bytes_per_row, budget)
    tile_rows = _cap_for_megacore(tile_rows, rows, sub)

    grid = (pl.cdiv(rows, tile_rows),)
    x_b = np.dtype(x.dtype).itemsize
    cost = pl.CostEstimate(
        flops=8 * rows * dim,
        transcendentals=rows,
        bytes_accessed=2 * rows * dim * x_b + 2 * dim * 4,
    )
    out = pl.pallas_call(
        functools.partial(_layernorm_kernel, eps=eps),
        out_shape=jax.ShapeDtypeStruct((rows, dim), x.dtype),
        grid_spec=pltpu.PrefetchScalarGridSpec(
            num_scalar_prefetch=0,
            grid=grid,
            in_specs=[
                pl.BlockSpec((tile_rows, dim), lambda i: (i, 0)),
                pl.BlockSpec((1, dim), lambda i: (0, 0)),
                pl.BlockSpec((1, dim), lambda i: (0, 0)),
            ],
            out_specs=pl.BlockSpec((tile_rows, dim), lambda i: (i, 0)),
        ),
        compiler_params=pltpu.CompilerParams(
            dimension_semantics=("parallel",),
            vmem_limit_bytes=vmem_limit,
        ),
        cost_estimate=cost,
    )(x2, g2, b2)
    return out.reshape(orig_shape)


# ---------------------------------------------------------------------------
# Fused PreNorm + Linear projection kernels
# ---------------------------------------------------------------------------
def _prenorm_linear_single_kernel(x_ref, g_ref, b_ref, w_ref, wb_ref, o_ref, *,
                                  eps, mxu_dtype):
    # Single output-N tile: normalize in registers, feed MXU directly (no scratch).
    x = x_ref[...].astype(jnp.float32)
    inv_dim = 1.0 / x.shape[-1]
    mean = jnp.sum(x, axis=-1, keepdims=True) * inv_dim
    c = x - mean
    var = jnp.sum(c * c, axis=-1, keepdims=True) * inv_dim
    y = c * jax.lax.rsqrt(var + eps)
    normed = (y * g_ref[...].astype(jnp.float32)
              + b_ref[...].astype(jnp.float32)).astype(mxu_dtype)
    acc = jnp.dot(normed, w_ref[...].astype(mxu_dtype),
                  preferred_element_type=jnp.float32)
    o_ref[...] = (acc + wb_ref[...].astype(jnp.float32)).astype(o_ref.dtype)


def _prenorm_linear_tiled_kernel(x_ref, g_ref, b_ref, w_ref, wb_ref, o_ref,
                                 normed_ref, *, eps):
    j = pl.program_id(1)

    @pl.when(j == 0)  # normalize (and cast to MXU dtype) once per row tile
    def _():
        x = x_ref[...].astype(jnp.float32)
        inv_dim = 1.0 / x.shape[-1]
        mean = jnp.sum(x, axis=-1, keepdims=True) * inv_dim
        c = x - mean
        var = jnp.sum(c * c, axis=-1, keepdims=True) * inv_dim
        y = c * jax.lax.rsqrt(var + eps)
        normed = y * g_ref[...].astype(jnp.float32) + b_ref[...].astype(jnp.float32)
        normed_ref[...] = normed.astype(normed_ref.dtype)

    acc = jnp.dot(normed_ref[...], w_ref[...].astype(normed_ref.dtype),
                  preferred_element_type=jnp.float32)
    o_ref[...] = (acc + wb_ref[...].astype(jnp.float32)).astype(o_ref.dtype)


def prenorm_linear_pallas(x, gamma, beta, w, wb=None, *, eps=1e-5,
                          tile_rows=None, tile_n=None):
    """fn(LayerNorm(x)) with fn = Linear(w, wb), fused in one pallas_call."""
    orig_shape = x.shape
    dim = orig_shape[-1]
    n_out = w.shape[-1]
    rows = math.prod(orig_shape[:-1]) if len(orig_shape) > 1 else 1
    x2 = x.reshape(rows, dim)
    g2 = gamma.reshape(1, dim)
    b2 = beta.reshape(1, dim)
    if wb is None:
        wb = jnp.zeros((n_out,), dtype=x.dtype)
    wb2 = wb.reshape(1, n_out)

    out_dtype = x.dtype
    mxu_dtype = _mxu_dtype(w.dtype)
    sub = _sublane_multiple(x.dtype)
    cap = _vmem_capacity_bytes()
    vmem_limit = int(cap * 3 // 4)
    budget = max(vmem_limit - (6 << 20), 2 << 20)  # keep headroom for compiler scratch

    x_b = np.dtype(x.dtype).itemsize
    o_b = np.dtype(out_dtype).itemsize
    w_b = np.dtype(w.dtype).itemsize
    m_b = np.dtype(mxu_dtype).itemsize

    # --- choose tile_n (budget-aware; prefer full-W residency) ----------------
    if tile_n is None:
        min_rows_bytes = sub * (dim * (2 * x_b + m_b + 12) + 2 * n_out * o_b)
        if 2 * dim * n_out * w_b + 2 * n_out * o_b + min_rows_bytes <= budget:
            tile_n = n_out  # W resident: constant index_map, DMA'd once
        else:
            tile_n = 512
            while tile_n > 128 and (2 * dim * tile_n * w_b + min_rows_bytes) > budget:
                tile_n //= 2
            tile_n = min(tile_n, n_out)
            # TODO(synk): add K (dim) tiling for very large dim (>= 4096).

    single_j = tile_n >= n_out

    # --- choose tile_rows ------------------------------------------------------
    if tile_rows is None:
        fixed = 2 * dim * min(tile_n, n_out) * w_b + 2 * n_out * o_b + 4 * dim * 4
        if single_j:
            bytes_per_row = dim * (2 * x_b + 12) + 2 * n_out * o_b
        else:
            bytes_per_row = dim * (2 * x_b + m_b + 12) + 2 * tile_n * o_b
        row_budget = max(budget - fixed, sub * bytes_per_row)
        tile_rows = _auto_tile_rows(rows, sub, bytes_per_row, row_budget)
    tile_rows = _cap_for_megacore(tile_rows, rows, sub)

    cost = pl.CostEstimate(
        flops=2 * rows * dim * n_out,
        transcendentals=rows,
        bytes_accessed=rows * dim * x_b + dim * n_out * w_b + rows * n_out * o_b,
    )

    if single_j:
        grid = (pl.cdiv(rows, tile_rows),)
        out = pl.pallas_call(
            functools.partial(_prenorm_linear_single_kernel, eps=eps,
                              mxu_dtype=mxu_dtype),
            out_shape=jax.ShapeDtypeStruct((rows, n_out), out_dtype),
            grid_spec=pltpu.PrefetchScalarGridSpec(
                num_scalar_prefetch=0,
                grid=grid,
                in_specs=[
                    pl.BlockSpec((tile_rows, dim), lambda i: (i, 0)),
                    pl.BlockSpec((1, dim), lambda i: (0, 0)),
                    pl.BlockSpec((1, dim), lambda i: (0, 0)),
                    pl.BlockSpec((dim, n_out), lambda i: (0, 0)),
                    pl.BlockSpec((1, n_out), lambda i: (0, 0)),
                ],
                out_specs=pl.BlockSpec((tile_rows, n_out), lambda i: (i, 0)),
            ),
            compiler_params=pltpu.CompilerParams(
                dimension_semantics=("parallel",),
                vmem_limit_bytes=vmem_limit,
            ),
            cost_estimate=cost,
        )(x2, g2, b2, w, wb2)
    else:
        grid = (pl.cdiv(rows, tile_rows), pl.cdiv(n_out, tile_n))
        out = pl.pallas_call(
            functools.partial(_prenorm_linear_tiled_kernel, eps=eps),
            out_shape=jax.ShapeDtypeStruct((rows, n_out), out_dtype),
            grid_spec=pltpu.PrefetchScalarGridSpec(
                num_scalar_prefetch=0,
                grid=grid,
                in_specs=[
                    pl.BlockSpec((tile_rows, dim), lambda i, j: (i, 0)),
                    pl.BlockSpec((1, dim), lambda i, j: (0, 0)),
                    pl.BlockSpec((1, dim), lambda i, j: (0, 0)),
                    pl.BlockSpec((dim, tile_n), lambda i, j: (0, j)),
                    pl.BlockSpec((1, tile_n), lambda i, j: (0, j)),
                ],
                out_specs=pl.BlockSpec((tile_rows, tile_n), lambda i, j: (i, j)),
                scratch_shapes=[pltpu.VMEM((tile_rows, dim), mxu_dtype)],
            ),
            compiler_params=pltpu.CompilerParams(
                dimension_semantics=("parallel", "arbitrary"),
                vmem_limit_bytes=vmem_limit,
            ),
            cost_estimate=cost,
        )(x2, g2, b2, w, wb2)
    return out.reshape(orig_shape[:-1] + (n_out,))


# ---------------------------------------------------------------------------
# Simple Linear + PreNorm modules (same forward semantics as the PyTorch spec)
# ---------------------------------------------------------------------------
class Linear:
    """y = x @ weight + bias, with weight of shape (dim_in, dim_out)."""

    def __init__(self, weight, bias=None):
        self.weight = weight
        self.bias = bias

    def __call__(self, x):
        y = jnp.dot(x, self.weight, precision=jax.lax.Precision.HIGHEST)
        if self.bias is not None:
            y = y + self.bias
        return y


class PreNorm:
    """forward(x, **kwargs) = fn(LayerNorm(x), **kwargs).

    LayerNorm runs as a Pallas TPU kernel. If fn is a Linear (the common
    CrossViT case), the whole PreNorm+Linear is fused into a single pallas_call
    so the normalized activations never round-trip through HBM.
    """

    def __init__(self, dim, fn):
        # nn.LayerNorm(dim) defaults: weight = ones, bias = zeros, eps = 1e-5
        self.dim = dim
        self.gamma = jnp.ones((dim,), dtype=jnp.float32)
        self.beta = jnp.zeros((dim,), dtype=jnp.float32)
        self.eps = 1e-5
        self.fn = fn

    def __call__(self, x, **kwargs):
        if isinstance(self.fn, Linear) and not kwargs:
            return prenorm_linear_pallas(x, self.gamma, self.beta,
                                         self.fn.weight, self.fn.bias, eps=self.eps)
        normed = layernorm_pallas(x, self.gamma, self.beta, eps=self.eps)
        return self.fn(normed, **kwargs)


if __name__ == "__main__":
    key = jax.random.PRNGKey(0)
    batch, seq, dim, n_out = 2, 8, 128, 128  # dim >= 128 keeps blocks lane-dense
    kx, kw, kb = jax.random.split(key, 3)
    x = jax.random.normal(kx, (batch, seq, dim), dtype=jnp.float32)
    w = jax.random.normal(kw, (dim, n_out), dtype=jnp.float32) * 0.02
    wb = jax.random.normal(kb, (n_out,), dtype=jnp.float32) * 0.02

    # Fused path: PreNorm(fn=Linear) dispatches to the single pallas_call kernel.
    module = PreNorm(dim, Linear(w, wb))
    out_fused = module(x)
    jax.block_until_ready(out_fused)

    # General path: Pallas LayerNorm followed by an arbitrary JAX fn.
    gelu_module = PreNorm(dim, jax.nn.gelu)
    out_gelu = gelu_module(x)
    jax.block_until_ready(out_gelu)

    # Pure-JAX reference.
    def ref_layernorm(x, g, b, eps=1e-5):
        mu = jnp.mean(x, axis=-1, keepdims=True)
        var = jnp.mean((x - mu) ** 2, axis=-1, keepdims=True)
        return (x - mu) / jnp.sqrt(var + eps) * g + b

    normed_ref = ref_layernorm(x, module.gamma, module.beta)
    ref_fused = jnp.dot(normed_ref, w, precision=jax.lax.Precision.HIGHEST) + wb
    ref_gelu = jax.nn.gelu(normed_ref)

    ln_pallas = layernorm_pallas(x, module.gamma, module.beta, eps=module.eps)
    jax.block_until_ready(ln_pallas)

    assert jnp.allclose(ln_pallas, normed_ref, atol=1e-4, rtol=1e-4), "layernorm mismatch"
    assert jnp.allclose(out_gelu, ref_gelu, atol=1e-3, rtol=1e-3), "PreNorm(fn) mismatch"
    # Fused path multiplies on the MXU in bf16 (f32 accumulation) -> looser tolerance.
    assert jnp.allclose(out_fused, ref_fused, atol=5e-2, rtol=5e-2), "fused PreNorm+linear mismatch"

    print("KERNEL_OK")
</pallas_src>

<mosaic_0001>
module attributes {stable_mosaic.version = 11 : i64} {
  func.func @_prenorm_linear_single_kernel(%arg0: i32, %arg1: memref<8x128xf32, #tpu.memory_space<vmem>>, %arg2: memref<1x128xf32, #tpu.memory_space<vmem>>, %arg3: memref<1x128xf32, #tpu.memory_space<vmem>>, %arg4: memref<128x128xf32, #tpu.memory_space<vmem>>, %arg5: memref<1x128xf32, #tpu.memory_space<vmem>>, %arg6: memref<8x128xf32, #tpu.memory_space<vmem>>) attributes {dimension_semantics = [#tpu.dimension_semantics<parallel>], iteration_bounds = array<i64: 2>, scalar_prefetch = 0 : i64, scratch_operands = 0 : i64, tpu.core_type = #tpu.core_type<tc>, window_params = [{transform_indices = @transform_0, window_bounds = array<i64: 8, 128>}, {pipeline_mode = #tpu.pipeline_mode<synchronous>, transform_indices = @transform_1, window_bounds = array<i64: 1, 128>}, {pipeline_mode = #tpu.pipeline_mode<synchronous>, transform_indices = @transform_2, window_bounds = array<i64: 1, 128>}, {pipeline_mode = #tpu.pipeline_mode<synchronous>, transform_indices = @transform_3, window_bounds = array<i64: 128, 128>}, {pipeline_mode = #tpu.pipeline_mode<synchronous>, transform_indices = @transform_4, window_bounds = array<i64: 1, 128>}, {transform_indices = @transform_5, window_bounds = array<i64: 8, 128>}]} {
    %c0 = arith.constant 0 : index
    %c0_0 = arith.constant 0 : index
    %0 = vector.load %arg1[%c0, %c0_0] : memref<8x128xf32, #tpu.memory_space<vmem>>, vector<8x128xf32>
    %cst = arith.constant dense<0.000000e+00> : vector<8xf32>
    %1 = vector.multi_reduction <add>, %0, %cst [1] : vector<8x128xf32> to vector<8xf32>
    %2 = vector.shape_cast %1 : vector<8xf32> to vector<8x1xf32>
    %cst_1 = arith.constant 7.812500e-03 : f32
    %3 = vector.broadcast %cst_1 : f32 to vector<8x1xf32>
    %4 = arith.mulf %2, %3 : vector<8x1xf32>
    %5 = vector.broadcast %4 : vector<8x1xf32> to vector<8x128xf32>
    %6 = arith.subf %0, %5 : vector<8x128xf32>
    %7 = arith.mulf %6, %6 : vector<8x128xf32>
    %cst_2 = arith.constant dense<0.000000e+00> : vector<8xf32>
    %8 = vector.multi_reduction <add>, %7, %cst_2 [1] : vector<8x128xf32> to vector<8xf32>
    %9 = vector.shape_cast %8 : vector<8xf32> to vector<8x1xf32>
    %cst_3 = arith.constant 7.812500e-03 : f32
    %10 = vector.broadcast %cst_3 : f32 to vector<8x1xf32>
    %11 = arith.mulf %9, %10 : vector<8x1xf32>
    %cst_4 = arith.constant 9.99999974E-6 : f32
    %12 = vector.broadcast %cst_4 : f32 to vector<8x1xf32>
    %13 = arith.addf %11, %12 : vector<8x1xf32>
    %14 = math.rsqrt %13 : vector<8x1xf32>
    %15 = vector.broadcast %14 : vector<8x1xf32> to vector<8x128xf32>
    %16 = arith.mulf %6, %15 : vector<8x128xf32>
    %c0_5 = arith.constant 0 : index
    %c0_6 = arith.constant 0 : index
    %17 = vector.load %arg2[%c0_5, %c0_6] : memref<1x128xf32, #tpu.memory_space<vmem>>, vector<1x128xf32>
    %18 = vector.broadcast %17 : vector<1x128xf32> to vector<8x128xf32>
    %19 = arith.mulf %16, %18 : vector<8x128xf32>
    %c0_7 = arith.constant 0 : index
    %c0_8 = arith.constant 0 : index
    %20 = vector.load %arg3[%c0_7, %c0_8] : memref<1x128xf32, #tpu.memory_space<vmem>>, vector<1x128xf32>
    %21 = vector.broadcast %20 : vector<1x128xf32> to vector<8x128xf32>
    %22 = arith.addf %19, %21 : vector<8x128xf32>
    %23 = arith.truncf %22 : vector<8x128xf32> to vector<8x128xbf16>
    %c0_9 = arith.constant 0 : index
    %c0_10 = arith.constant 0 : index
    %24 = vector.load %arg4[%c0_9, %c0_10] : memref<128x128xf32, #tpu.memory_space<vmem>>, vector<128x128xf32>
    %25 = arith.truncf %24 : vector<128x128xf32> to vector<128x128xbf16>
    %cst_11 = arith.constant dense<0.000000e+00> : vector<8x128xf32>
    %26 = tpu.matmul %23, %25, %cst_11 {dimension_numbers = #tpu.dot_dimension_numbers<[1], [0], [0], [1], [0, 0, 1, 1], [], []>} : vector<8x128xbf16>, vector<128x128xbf16>, vector<8x128xf32> -> vector<8x128xf32>
    %c0_12 = arith.constant 0 : index
    %c0_13 = arith.constant 0 : index
    %27 = vector.load %arg5[%c0_12, %c0_13] : memref<1x128xf32, #tpu.memory_space<vmem>>, vector<1x128xf32>
    %28 = vector.broadcast %27 : vector<1x128xf32> to vector<8x128xf32>
    %29 = arith.addf %26, %28 : vector<8x128xf32>
    %c0_14 = arith.constant 0 : index
    %c0_15 = arith.constant 0 : index
    %30 = vector.load %arg6[%c0_14, %c0_15] : memref<8x128xf32, #tpu.memory_space<vmem>>, vector<8x128xf32>
    tpu.vector_store %arg6[%c0_14, %c0_15], %29 {strides = array<i32>} : memref<8x128xf32, #tpu.memory_space<vmem>>, vector<8x128xf32>,
    return
  }
  func.func @transform_0(%arg0: i32) -> (i32, i32) {
    %c0_i32 = arith.constant 0 : i32
    %c0_i32_0 = arith.constant 0 : i32
    return %arg0, %c0_i32 : i32, i32
  }
  func.func @transform_1(%arg0: i32) -> (i32, i32) {
    %c0_i32 = arith.constant 0 : i32
    %c0_i32_0 = arith.constant 0 : i32
    %c0_i32_1 = arith.constant 0 : i32
    return %c0_i32, %c0_i32_0 : i32, i32
  }
  func.func @transform_2(%arg0: i32) -> (i32, i32) {
    %c0_i32 = arith.constant 0 : i32
    %c0_i32_0 = arith.constant 0 : i32
    %c0_i32_1 = arith.constant 0 : i32
    return %c0_i32, %c0_i32_0 : i32, i32
  }
  func.func @transform_3(%arg0: i32) -> (i32, i32) {
    %c0_i32 = arith.constant 0 : i32
    %c0_i32_0 = arith.constant 0 : i32
    %c0_i32_1 = arith.constant 0 : i32
    return %c0_i32, %c0_i32_0 : i32, i32
  }
  func.func @transform_4(%arg0: i32) -> (i32, i32) {
    %c0_i32 = arith.constant 0 : i32
    %c0_i32_0 = arith.constant 0 : i32
    %c0_i32_1 = arith.constant 0 : i32
    return %c0_i32, %c0_i32_0 : i32, i32
  }
  func.func @transform_5(%arg0: i32) -> (i32, i32) {
    %c0_i32 = arith.constant 0 : i32
    %c0_i32_0 = arith.constant 0 : i32
    return %arg0, %c0_i32 : i32, i32
  }
}

</mosaic_0001>

<bundles_post_ra>
// kernel: tpu_custom_call.1
= control target key start
LH: loop header
LB: loop body
LE: loop exit
PB: predicated region body
PF: predicated region fallthrough
CT: control target
= control target key end

     0   :  { %10 = vsyncpa [#allocation3], 0  ;;  %s936_s0 = inlined_call_operand.hbm [shape: f32[16,128], index: 0, kind: input, shape index: {}]   ;;  %s937_s1 = inlined_call_operand.vmem [shape: f32[1,128], index: 1, kind: input, shape index: {}]   ;;  %s938_s2 = inlined_call_operand.vmem [shape: f32[1,128], index: 2, kind: input, shape index: {}]   ;;  %s939_s3 = inlined_call_operand.hbm [shape: f32[128,128], index: 3, kind: input, shape index: {}]   ;;  %s940_s4 = inlined_call_operand.vmem [shape: f32[1,128], index: 4, kind: input, shape index: {}]   ;;  %s941_s5 = inlined_call_operand.hbm [shape: f32[16,128], index: 5, kind: output, shape index: {}]  }
   0x1   :  { %12 = vsyncpa [#allocation3 + $0x1], 0 }
   0x2   :  { %13 = vsyncpa [#allocation6], 0 }
   0x3   :  { %14 = vsyncpa [#allocation4], 0 }
   0x4   :  { %16 = vsyncpa [#allocation4 + $0x1], 0  ;;  %s727_s18 = smov 0   ;;  %s729_s19 = smov 0  }
   0x5   :  { %s731_s20 = smov 0   ;;  %s733_s21 = smov 0  }
   0x6 LB: > { %s748_s22 = sadd.s32 4294967295, %s688_s21   ;;  %s451_s23 = sadd.s32 4294967294, %s688_s21   ;;  %s688_s21 = sphi %s733_s21, %s961_s21   ;;  %s684_s20 = sphi %s731_s20, %s960_s20   ;;  %s680_s19 = sphi %s729_s19, %s959_s19   ;;  %s676_s18 = sphi %s727_s18, %s958_s18  }
   0x7   : > { %p42_p0 = scmp.ne.s32.totalorder %s680_s19, %s676_s18  ;;  %p942_p1 = scmp.eq.s32.totalorder %s748_s22, 0 }
   0x8   : > { %p156_p3 = scmp.eq.s32.totalorder %s451_s23, 1  ;;  %p452_p5 = scmp.ge.s32.totalorder %s688_s21, 1 }
   0x9   : > { %p757_p4 = por %p942_p1, %p42_p0  ;;  %p163_p7 = scmp.lt.s32.totalorder %s688_s21, 3 }
   0xa   : > { %p762_p6 = por %p156_p3, %p42_p0  ;;  %s690_s27 = smov [#allocation5]  }
   0xb   : > { %s945_s24 = scalar_select %p757_p4, 1, 0 }
   0xc   : > { %s946_s25 = scalar_select %p762_p6, 1, 0 }
   0xd   : > { %p767_p8 = pnand %p452_p5, %p163_p7  ;;  %s181_s28 = sshll.u32 %s690_s27, 4  ;;  %s771_s28 = int_to_ptr.vmem [resolvable:$true] %s181_s28 }
   0xe   : > { %s783_s30 = sadd.s32 1, %s688_s21   ;;  %s29_s6 = sadd.s32 1, %s684_s20 }
   0xf   : > { %s947_s26 = scalar_select %p767_p8, 1, 0 }
  0x10   : > { %p505_p9 = pneg %p767_p8  ;;  %s26_s7 = ssub.s32 %s688_s21, %s783_s30 }
  0x11   : > { %s560_s10 = scalar_lea.hbm %s939_s3, 2048 }
  0x12   : > { %p778_p11 = pnand %p505_p9, %p942_p1  ;;  %p561_p12 = scmp.ne.s32.totalorder %s939_s3, %s560_s10 }
  0x13   : > { %p567_p5 = scmp.lt.u32.totalorder %s560_s10, %s939_s3 }
  0x14   : > { %p562_p13 = pneg %p778_p11 }
  0x16   : > { %p563_p0 = pnand %p562_p13, %p561_p12 }
  0x18   : > { %p564_p3 = pneg %p563_p0 }
  0x1a   : > { %p569_p7 = pnand %p567_p5, %p564_p3 }
  0x1c   : > { %572 = shalt.err (!%p569_p7)
}
  0x1d   : > { %s573_s15 = scalar_lea.vmem %s771_s28, 2048  ;;  %p581_p2 = scmp.lt.s32.totalorder %s771_s28, %s771_s28 }
  0x1e   : > { %p574_p9 = scmp.ne.s32.totalorder %s771_s28, %s573_s15  ;;  %p582_p6 = scmp.lt.s32.totalorder %s573_s15, %s573_s15 }
  0x20   : > { %p576_p10 = pnand %p574_p9, %p562_p13  ;;  %p583_p4 = por %p582_p6, %p581_p2 }
  0x22   : > { %p577_p1 = pneg %p576_p10 }
  0x24   : > { %p584_p8 = pnand %p583_p4, %p577_p1 }
  0x26   : > { %587 = shalt.err (!%p584_p8)
}
  0x27   : > { %s691_s16 = smov 128   ;;  %s692_s17 = smov 8  }
  0x28   : > { %508 = dma.hbm_to_vmem [thread:$0]  (!%p778_p11), %s939_s3, 2048, %s771_s28, [#allocation6], %s691_s16, %s691_s16, %s692_s17  }
  0x29   : > { %p27_p2 = scmp.eq.s32.totalorder %s26_s7, 0  ;;  %p36_p1 = scmp.ne.s32.totalorder %s684_s20, %s680_s19 }
  0x2a   : > { %p37_p4 = scmp.eq.s32.totalorder %s688_s21, 0  ;;  %p518_p6 = scmp.lt.s32.totalorder %s688_s21, 2 }
  0x2b   : > { %s814_s8 = scalar_select %p27_p2, %s684_s20, %s29_s6  }
  0x2c   : > { %p38_p8 = por %p37_p4, %p36_p1  ;;  %p949_p10 = scmp.eq.s32.totalorder %s748_s22, 1 }
  0x2d   : > { %s198_s10 = sand.u32 1, %s684_s20   ;;  %s456_s11 = sshll.u32 %s688_s21, 7 }
  0x2e   : > { %p818_p12 = por %p949_p10, %p36_p1  ;;  %s455_s12 = sshll.u32 %s198_s10, 3 }
  0x2f   : > { %s827_s14 = scalar_lea.hbm %s936_s0, %s456_s11  ;;  %s202_s28 = scalar_lea.vmem [#allocation2], %s455_s12 }
  0x30   : > { %s209_s6 = sshll.u32 %s202_s28, 4  ;;  %p829_p11 = pnand %p518_p6, %p38_p8  ;;  %s833_s6 = int_to_ptr.vmem [resolvable:$true] %s209_s6 }
  0x31   : > { %s199_s15 = scalar_lea.sflag [#allocation3], %s198_s10  ;;  %s588_s16 = scalar_lea.hbm %s827_s14, 128 }
  0x32   : > { %p589_p13 = scmp.ne.s32.totalorder %s827_s14, %s588_s16  ;;  %p590_p0 = pneg %p829_p11 }
  0x33   : > { %s593_s27 = scalar_lea.hbm %s936_s0, 256  ;;  %p594_p7 = scmp.lt.u32.totalorder %s827_s14, %s936_s0 }
  0x34   : > { %p591_p3 = pnand %p590_p0, %p589_p13  ;;  %p595_p9 = scmp.lt.u32.totalorder %s593_s27, %s588_s16 }
  0x35   : > { %p597_p1 = scmp.lt.u32.totalorder %s588_s16, %s827_s14 }
  0x36   : > { %p592_p5 = pneg %p591_p3  ;;  %p596_p2 = por %p595_p9, %p594_p7 }
  0x38   : > { %p598_p4 = por %p597_p1, %p596_p2 }
  0x3a   : > { %p599_p6 = pnand %p598_p4, %p592_p5 }
  0x3c   : > { %602 = shalt.err (!%p599_p6)
}
  0x3d   : > { %s603_s10 = scalar_lea.vmem %s833_s6, 128  ;;  %s693_s29 = smov [#allocation2]  }
  0x3e   : > { %p604_p8 = scmp.ne.s32.totalorder %s833_s6, %s603_s10  ;;  %s608_s13 = sshll.u32 %s693_s29, 4  ;;  %s609_s13 = int_to_ptr.vmem [resolvable:$false] %s608_s13 }
  0x3f   : > { %s610_s28 = scalar_lea.vmem %s609_s13, 256  ;;  %p611_p3 = scmp.lt.s32.totalorder %s833_s6, %s609_s13 }
  0x40   : > { %p606_p10 = pnand %p604_p8, %p590_p0  ;;  %p612_p7 = scmp.lt.s32.totalorder %s610_s28, %s603_s10 }
  0x42   : > { %p607_p13 = pneg %p606_p10  ;;  %p613_p9 = por %p612_p7, %p611_p3 }
  0x44   : > { %p614_p2 = pnand %p613_p9, %p607_p13 }
  0x46   : > { %617 = shalt.err (!%p614_p2)
}
  0x47   : > { %512 = dma.hbm_to_vmem [thread:$0]  (!%p829_p11), %s827_s14, 128, %s833_s6, %s199_s15  }
  0x48   : > { %p952_p5 = scmp.ne.s32.totalorder %s947_s26, 0 }
  0x49   : > { %s863_s16 = sand.u32 (!%p952_p5), 1, %s680_s19   ;;  %p953_p0 = scmp.ne.s32.totalorder (!%p952_p5), %s945_s24, 0 }
  0x4a   : > { %218 = sbr.rel (%p952_p5) target bundleno = 627 (0x273), region = 40  ;;  %s458_s17 = sshll.u32 (!%p952_p5), %s863_s16, 3 }
  0x4b   : > { %s221_s23 = scalar_lea.sflag (!%p952_p5), [#allocation3], %s863_s16  ;;  %s224_s27 = scalar_lea.vmem (!%p952_p5), [#allocation2], %s458_s17 }
  0x51   : > { %663 = dma.done.wait (%p953_p0), %s221_s23, 128  }
  0x52   : > { %665 = vsyncadd (%p953_p0), %s221_s23, 4294967168  ;;  %p954_p11 = scmp.eq.s32.totalorder %s748_s22, 0 }
  0x54   : > { %667 = dma.done.wait (%p954_p11), [#allocation6], 2048   ;;  %p955_p1 = pmov %p954_p11 }
  0x55   : > { %v256_v0 = vld [vmem:[%s224_s27] sm:$0xff]  ;;  %v285_v1 = vld [vmem:[#allocation5] sm:$0xff]  ;;  %v286_v2 = vld [vmem:[#allocation5 + $0x8] sm:$0xff]  ;;  %v694_v4 = vmov 0.0   ;;  %vm695_vm0 = vmmov 0   ;;  %s465_s11 = sshll.u32 %s748_s22, 7 }
  0x56   : > { %669 = vsyncadd (%p955_p1), [#allocation6], 4294965248  ;;  %257 = vadd.xlane.f32.xlu0 %v256_v0  ;;  %v287_v3 = vld [vmem:[#allocation5 + $0x10] sm:$0xff]  ;;  %477 = vmatprep.subr.bf16.mxu0 %v694_v4  ;;  %v301_v5 = vpack.c.bf16 %v286_v2, %v285_v1  ;;  %v288_v6 = vld [vmem:[#allocation5 + $0x18] sm:$0xff]  ;;  %s254_s12 = scalar_lea.vmem [#allocation7], %s458_s17  ;;  %s892_s28 = scalar_lea.hbm %s941_s5, %s465_s11 }
  0x57   : > { %v302_v7 = vpack.c.bf16 %v288_v6, %v287_v3  ;;  %v289_v12 = vld [vmem:[#allocation5 + $0x20] sm:$0xff]  ;;  %v290_v13 = vld [vmem:[#allocation5 + $0x28] sm:$0xff]  ;;  %v291_v15 = vld [vmem:[#allocation5 + $0x30] sm:$0xff]  ;;  %493 = vmatprep.mubr.msk.bf16.mxu0 %vm695_vm0, %v694_v4  ;;  %s371_s10 = sshll.u32 %s254_s12, 4  ;;  %s358_s22 = scalar_lea.sflag [#allocation4], %s863_s16  ;;  %s894_s10 = int_to_ptr.vmem [resolvable:$true] %s371_s10 }
  0x58   : > { %478 = vmatpush3.bf16.msra.mxu0 %v301_v5  ;;  %v303_v14 = vpack.c.bf16 %v290_v13, %v289_v12  ;;  %v292_v16 = vld [vmem:[#allocation5 + $0x38] sm:$0xff]  ;;  %v293_v18 = vld [vmem:[#allocation5 + $0x40] sm:$0xff]  ;;  %v294_v19 = vld [vmem:[#allocation5 + $0x48] sm:$0xff]  ;;  %s618_s23 = scalar_lea.vmem %s894_s10, 128  ;;  %s696_s17 = smov [#allocation7]  }
  0x59   : > { %479 = vmatprep.subr.bf16.mxu0 %v694_v4  ;;  %v304_v17 = vpack.c.bf16 %v292_v16, %v291_v15  ;;  %v305_v20 = vpack.c.bf16 %v294_v19, %v293_v18  ;;  %v295_v21 = vld [vmem:[#allocation5 + $0x50] sm:$0xff]  ;;  %v296_v22 = vld [vmem:[#allocation5 + $0x58] sm:$0xff]  ;;  %v297_v24 = vld [vmem:[#allocation5 + $0x60] sm:$0xff]  ;;  %p619_p4 = scmp.ne.s32.totalorder %s894_s10, %s618_s23  ;;  %s622_s27 = sshll.u32 %s696_s17, 4  ;;  %s623_s27 = int_to_ptr.vmem [resolvable:$false] %s622_s27 }
  0x5a   : > { %v306_v23 = vpack.c.bf16 %v296_v22, %v295_v21  ;;  %v298_v25 = vld [vmem:[#allocation5 + $0x68] sm:$0xff]  ;;  %v299_v27 = vld [vmem:[#allocation5 + $0x70] sm:$0xff]  ;;  %v300_v28 = vld [vmem:[#allocation5 + $0x78] sm:$0xff]  ;;  %s624_s24 = scalar_lea.vmem %s623_s27, 256  ;;  %p625_p10 = scmp.lt.s32.totalorder %s894_s10, %s623_s27 }
  0x5b   : > { %v307_v26 = vpack.c.bf16 %v298_v25, %v297_v24  ;;  %v308_v29 = vpack.c.bf16 %v300_v28, %v299_v27  ;;  %v461_v34 = vld [vmem:[%s937_s1] ss:$0 sm:$0xff]  ;;  %p620_p6 = pnand %p619_p4, %p818_p12  ;;  %p626_p13 = scmp.lt.s32.totalorder %s624_s24, %s618_s23 }
  0x5c   : > { %480 = vmatpush3.bf16.msra.mxu0 %v302_v7  ;;  %v462_v36 = vld [vmem:[%s938_s2] ss:$0 sm:$0xff] }
  0x5d   : > { %481 = vmatprep.subr.bf16.mxu0 %v694_v4  ;;  %v463_v40 = vld [vmem:[%s940_s4] ss:$0 sm:$0xff]  ;;  %p621_p8 = pneg %p620_p6  ;;  %p627_p3 = por %p626_p13, %p625_p10 }
  0x5f   : > { %p628_p7 = pnand %p627_p3, %p621_p8 }
  0x60   : > { %482 = vmatpush3.bf16.msra.mxu0 %v303_v14 }
  0x61   : > { %483 = vmatprep.subr.bf16.mxu0 %v694_v4 }
  0x64   : > { %484 = vmatpush3.bf16.msra.mxu0 %v304_v17 }
  0x65   : > { %485 = vmatprep.subr.bf16.mxu0 %v694_v4 }
  0x68   : > { %486 = vmatpush3.bf16.msra.mxu0 %v305_v20 }
  0x69   : > { %487 = vmatprep.subr.bf16.mxu0 %v694_v4 }
  0x6c   : > { %488 = vmatpush3.bf16.msra.mxu0 %v306_v23 }
  0x6d   : > { %489 = vmatprep.subr.bf16.mxu0 %v694_v4 }
  0x70   : > { %490 = vmatpush3.bf16.msra.mxu0 %v307_v26 }
  0x71   : > { %491 = vmatprep.subr.bf16.mxu0 %v694_v4 }
  0x74   : > { %492 = vmatpush3.bf16.msra.mxu0 %v308_v29 }
  0xe3   : > { %v258_v8 = vpop.xlane.xlu0 %257 }
  0xe4   : > { %v259_v9 = vmul.f32 0.0078125, %v258_v8 }
  0xe6   : > { %v260_v10 = vsub.f32 %v256_v0, %v259_v9 }
  0xe8   : > { %v261_v11 = vmul.f32 %v260_v10, %v260_v10 }
  0xea   : > { %262 = vadd.xlane.f32.xlu0 %v261_v11 }
 0x177   : > { %v263_v30 = vpop.xlane.xlu0 %262 }
 0x178   : > { %v264_v31 = vmul.f32 0.0078125, %v263_v30 }
 0x17a   : > { %v265_v32 = vadd.f32 1e-05, %v264_v31 }
 0x17c   : > { %558 = vrsqrt.f32 %v265_v32 }
 0x186   : > { %v559_v33 = vpop.eup %558 }
 0x187   : > { %v267_v35 = vmul.f32 %v559_v33, %v260_v10 }
 0x189   : > { %v275_v37 = vmul.f32 %v461_v34, %v267_v35 }
 0x18b   : > { %v283_v38 = vadd.f32 %v462_v36, %v275_v37 }
 0x18d   : > { %v284_v39 = vpack.c.bf16 %v283_v38, %v283_v38 }
 0x18f   : > { %494 = vmatmul.mubr.bf16.vlgmr.msra.gmra.mrb[0].mxu0 %v284_v39 }
 0x262   : > { %v350_v41 = vpop.f32.mrb[0].mxu0 }
 0x263   : > { %v351_v42 = vadd.f32 %v463_v40, %v350_v41  ;;  %v495_v43 = vpop.f32.mrb[1].mxu0 }
 0x264   : > { %v353_v44 = vpop.f32.mrb[2].mxu0 }
 0x265   : > { %356 = vst [vmem:[%s254_s12] sm:$0xff] %v351_v42  ;;  %v496_v45 = vpop.f32.mrb[3].mxu0 }
 0x266   : > { %631 = shalt.err (!%p628_p7)
}
 0x267   : > { %s632_s16 = scalar_lea.hbm %s892_s28, 128  ;;  %s636_s6 = scalar_lea.hbm %s941_s5, 256 }
 0x268   : > { %p633_p9 = scmp.ne.s32.totalorder %s892_s28, %s632_s16  ;;  %p637_p0 = scmp.lt.u32.totalorder %s892_s28, %s941_s5 }
 0x269   : > { %p638_p11 = scmp.lt.u32.totalorder %s636_s6, %s632_s16  ;;  %p640_p4 = scmp.lt.u32.totalorder %s632_s16, %s892_s28 }
 0x26a   : > { %p634_p2 = pnand %p633_p9, %p818_p12 }
 0x26b   : > { %p639_p1 = por %p638_p11, %p637_p0 }
 0x26c   : > { %p635_p5 = pneg %p634_p2 }
 0x26d   : > { %p641_p6 = por %p640_p4, %p639_p1 }
 0x26f   : > { %p642_p8 = pnand %p641_p6, %p635_p5 }
 0x271   : > { %645 = shalt.err (!%p642_p8)
}
 0x272   : > { %503 = dma.vmem_to_hbm [thread:$0]  (%p818_p12), %s894_s10, 128, %s892_s28, %s358_s22  }
 0x273 PF: > { %s383_s11 = sand.u32 1, %s676_s18   ;;  %p956_p10 = scmp.ne.s32.totalorder %s946_s25, 0 }
 0x274   : > { %p957_p13 = scmp.ge.s32.totalorder %s688_s21, 2  ;;  %s384_s12 = scalar_lea.sflag [#allocation4], %s383_s11 }
 0x276   : > { %p514_p3 = pnand %p957_p13, %p956_p10 }
 0x278   : > { %671 = dma.done.wait (!%p514_p3), %s384_s12, 128  }
 0x279   : > { %673 = vsyncadd (!%p514_p3), %s384_s12, 4294967168  ;;  %p19_p7 = scmp.ge.s32.totalorder %s783_s30, 4   ;;  %s958_s18 = smov %s680_s19 }
 0x27a   : > { %s959_s19 = smov %s684_s20  ;;  %s960_s20 = smov %s814_s8 }
 0x27b   : > { %s961_s21 = smov %s783_s30  ;;  %21 = sbr.rel (!%p19_p7) target bundleno = 6 (0x6), region = 89 }
 0x282   :  { %389 = vsyncpa [#allocation3], 1 }
 0x283   :  { %391 = vsyncpa [#allocation3 + $0x1], 1 }
 0x284   :  { %392 = vsyncpa [#allocation6], 1 }
 0x285   :  { %393 = vsyncpa [#allocation4], 1 }
 0x286   :  { %395 = vsyncpa [#allocation4 + $0x1], 1 }

</bundles_post_ra>
